<compile_context>
chip_gen: v7x
topology: tpu7x:2x2x1
jax: 0.10.0
libtpu: 0.0.40
codegen_flags: <defaults>
</compile_context>

<pallas_src>
from functools import partial

import jax
import jax.numpy as jnp
from jax.experimental import pallas as pl
from jax.experimental.pallas import tpu as pltpu


def _round_up(n, m):
    return ((n + m - 1) // m) * m


def _cdiv(a, b):
    return (a + b - 1) // b


def _device_kind():
    try:
        return jax.devices()[0].device_kind.lower()
    except Exception:
        return ""


def _mxu_align():
    # v6e / v7x have a 256-wide MXU: pad K/E to 256 there so systolic passes
    # run full width.  v5e (4x128^2 MXU) and unknown chips only need 128.
    kind = _device_kind()
    return 256 if ("v6" in kind or "v7" in kind) else 128


def _vmem_cap_bytes():
    # Per-TensorCore ceiling used to clamp vmem_limit_bytes.
    kind = _device_kind()
    if "v7" in kind:
        return 56 << 20     # v7x: 64 MiB physical per TC, leave headroom
    if "v5" in kind or "v6" in kind:
        return 100 << 20    # v5e/v5p/v6e: 128 MiB physical
    return 48 << 20         # unknown generation: stay conservative


def _patch_embed_kernel(x_ref, w_ref, b_ref, o_ref):
    # x_ref: (TM, Kp) patch-matrix tile (compute dtype, e.g. bf16), streamed
    # w_ref: (Kp, Ep) projection weight (constant index_map -> VMEM-resident)
    # b_ref: (1, Ep)  bias in f32, added against the f32 MXU accumulator
    # o_ref: (TM, Ep) output tile
    acc = jnp.dot(x_ref[...], w_ref[...], preferred_element_type=jnp.float32)
    o_ref[...] = (acc + b_ref[...]).astype(o_ref.dtype)


@partial(jax.jit,
         static_argnames=("patch_size", "compute_dtype", "out_dtype", "block_m"))
def patch_embed(x, weight, bias, *, patch_size, compute_dtype=jnp.bfloat16,
                out_dtype=None, block_m=2048):
    """
    x:      (B, C, H, W)  NCHW, like the PyTorch module's input
    weight: (E, C, p, p)  Conv2d weight
    bias:   (E,)          Conv2d bias
    returns (B, num_patches, E) == proj(x).flatten(2).transpose(1, 2)
            in `out_dtype` (defaults to `compute_dtype`).
    """
    B, C, H, W = x.shape
    E = weight.shape[0]
    p = patch_size
    assert H % p == 0 and W % p == 0, "image size must be divisible by patch size"
    gh, gw = H // p, W // p
    num_patches = gh * gw

    out_dt = jnp.dtype(compute_dtype) if out_dtype is None else jnp.dtype(out_dtype)

    # --- im2col: per-patch flattening order is (C, ph, pw), identical to the
    # flattened Conv2d weight.  allow_input_fusion below lets XLA fuse this
    # transpose/pad/cast into the kernel's input reads (no HBM round-trip).
    xp = x.reshape(B, C, gh, p, gw, p)
    xp = jnp.transpose(xp, (0, 2, 4, 1, 3, 5))
    patches = xp.reshape(B * num_patches, C * p * p)
    M, K = patches.shape

    # --- pad to MXU/lane-friendly sizes (zero padding keeps the math exact).
    align = _mxu_align()
    Kp = _round_up(K, align)
    Ep = _round_up(E, align)
    M8 = _round_up(M, 8)

    # M tile: as large as block_m, but always >= 2 tiles whenever M allows
    # (> 8 rows) so the "parallel" grid axis can feed both v7x TensorCores.
    if M8 <= 8:
        TM = M8
    else:
        TM = min(block_m, _round_up(_cdiv(M8, 2), 8))
    Mp = _round_up(M, TM)
    n_m = Mp // TM

    patches_p = jnp.pad(patches, ((0, Mp - M), (0, Kp - K))).astype(compute_dtype)
    w_mat = jnp.pad(weight.reshape(E, K).T, ((0, Kp - K), (0, Ep - E)))
    w_mat = w_mat.astype(compute_dtype)                          # (Kp, Ep)
    b_mat = jnp.pad(bias, (0, Ep - E)).astype(jnp.float32).reshape(1, Ep)

    op_bytes = jnp.dtype(compute_dtype).itemsize
    out_bytes = out_dt.itemsize

    # VMEM: double-buffered streamed patch tile + double-buffered output tile
    # + weight/bias (counted double-buffered, as the default pipeliner
    # allocates) + the (TM, Ep) f32 matmul-accumulator / epilogue temp.
    vmem_need = (2 * TM * Kp * op_bytes
                 + 2 * Kp * Ep * op_bytes
                 + 2 * Ep * 4
                 + 2 * TM * Ep * out_bytes
                 + TM * Ep * 4)
    vmem_limit = int(min(max(vmem_need + (4 << 20), 8 << 20), _vmem_cap_bytes()))

    cost = pl.CostEstimate(
        flops=2 * Mp * Kp * Ep,
        transcendentals=0,
        bytes_accessed=(Mp * Kp * op_bytes + Kp * Ep * op_bytes
                        + Ep * 4 + Mp * Ep * out_bytes),
    )

    out = pl.pallas_call(
        _patch_embed_kernel,
        out_shape=jax.ShapeDtypeStruct((Mp, Ep), out_dt),
        grid_spec=pltpu.PrefetchScalarGridSpec(
            num_scalar_prefetch=0,
            grid=(n_m,),
            in_specs=[
                pl.BlockSpec((TM, Kp), lambda i: (i, 0)),   # streamed M tiles
                pl.BlockSpec((Kp, Ep), lambda i: (0, 0)),   # resident weight
                pl.BlockSpec((1, Ep), lambda i: (0, 0)),    # resident bias
            ],
            out_specs=pl.BlockSpec((TM, Ep), lambda i: (i, 0)),
        ),
        compiler_params=pltpu.CompilerParams(
            dimension_semantics=("parallel",),
            vmem_limit_bytes=vmem_limit,
            allow_input_fusion=[True, False, False],
        ),
        cost_estimate=cost,
    )(patches_p, w_mat, b_mat)

    return out[:M, :E].reshape(B, num_patches, E)


if __name__ == "__main__":
    # Small, module-consistent shapes: img_size=16, patch_size=4, in_c=4, embed_dim=32
    B, C, H, W = 2, 4, 16, 16
    patch_size = 4
    embed_dim = 32

    key = jax.random.PRNGKey(0)
    kx, kw, kb = jax.random.split(key, 3)

    x = jax.random.normal(kx, (B, C, H, W), dtype=jnp.float32)
    weight = jax.random.normal(kw, (embed_dim, C, patch_size, patch_size),
                               dtype=jnp.float32) * 0.02
    bias = jax.random.normal(kb, (embed_dim,), dtype=jnp.float32) * 0.02

    # Reference: same semantics as nn.Conv2d + flatten(2).transpose(1, 2).
    ref = jax.lax.conv_general_dilated(
        x, weight, window_strides=(patch_size, patch_size), padding="VALID",
        dimension_numbers=("NCHW", "OIHW", "NCHW"))
    ref = ref + bias.reshape(1, embed_dim, 1, 1)
    ref = ref.reshape(B, embed_dim, -1).transpose(0, 2, 1)

    expected_shape = (B, (H // patch_size) * (W // patch_size), embed_dim)

    # f32 operand/output path: exact check against the conv reference.
    out_f32 = jax.block_until_ready(
        patch_embed(x, weight, bias, patch_size=patch_size,
                    compute_dtype=jnp.float32, out_dtype=jnp.float32))
    assert out_f32.shape == expected_shape
    assert out_f32.dtype == jnp.float32
    assert jnp.allclose(out_f32, ref, atol=1e-4, rtol=1e-4)

    # Default production path: bf16 operands + bf16 output (MXU-friendly,
    # halves writeback traffic).  Looser tolerance.
    out_bf16 = jax.block_until_ready(
        patch_embed(x, weight, bias, patch_size=patch_size))
    assert out_bf16.shape == expected_shape
    assert out_bf16.dtype == jnp.bfloat16
    assert jnp.allclose(out_bf16.astype(jnp.float32), ref, atol=5e-2, rtol=5e-2)

    print("KERNEL_OK")
</pallas_src>

<mosaic_0001>
module attributes {stable_mosaic.version = 11 : i64} {
  func.func @_patch_embed_kernel(%arg0: i32, %arg1: memref<16x128xf32, #tpu.memory_space<vmem>>, %arg2: memref<128x128xf32, #tpu.memory_space<vmem>>, %arg3: memref<1x128xf32, #tpu.memory_space<vmem>>, %arg4: memref<16x128xf32, #tpu.memory_space<vmem>>) attributes {dimension_semantics = [#tpu.dimension_semantics<parallel>], iteration_bounds = array<i64: 2>, scalar_prefetch = 0 : i64, scratch_operands = 0 : i64, tpu.core_type = #tpu.core_type<tc>, window_params = [{transform_indices = @transform_0, window_bounds = array<i64: 16, 128>}, {pipeline_mode = #tpu.pipeline_mode<synchronous>, transform_indices = @transform_1, window_bounds = array<i64: 128, 128>}, {pipeline_mode = #tpu.pipeline_mode<synchronous>, transform_indices = @transform_2, window_bounds = array<i64: 1, 128>}, {transform_indices = @transform_3, window_bounds = array<i64: 16, 128>}]} {
    %c0 = arith.constant 0 : index
    %c0_0 = arith.constant 0 : index
    %0 = vector.load %arg1[%c0, %c0_0] : memref<16x128xf32, #tpu.memory_space<vmem>>, vector<16x128xf32>
    %c0_1 = arith.constant 0 : index
    %c0_2 = arith.constant 0 : index
    %1 = vector.load %arg2[%c0_1, %c0_2] : memref<128x128xf32, #tpu.memory_space<vmem>>, vector<128x128xf32>
    %cst = arith.constant dense<0.000000e+00> : vector<16x128xf32>
    %2 = tpu.matmul %0, %1, %cst {dimension_numbers = #tpu.dot_dimension_numbers<[1], [0], [0], [1], [0, 0, 1, 1], [], []>} : vector<16x128xf32>, vector<128x128xf32>, vector<16x128xf32> -> vector<16x128xf32>
    %c0_3 = arith.constant 0 : index
    %c0_4 = arith.constant 0 : index
    %3 = vector.load %arg3[%c0_3, %c0_4] : memref<1x128xf32, #tpu.memory_space<vmem>>, vector<1x128xf32>
    %4 = vector.broadcast %3 : vector<1x128xf32> to vector<16x128xf32>
    %5 = arith.addf %2, %4 : vector<16x128xf32>
    %c0_5 = arith.constant 0 : index
    %c0_6 = arith.constant 0 : index
    %6 = vector.load %arg4[%c0_5, %c0_6] : memref<16x128xf32, #tpu.memory_space<vmem>>, vector<16x128xf32>
    tpu.vector_store %arg4[%c0_5, %c0_6], %5 {strides = array<i32>} : memref<16x128xf32, #tpu.memory_space<vmem>>, vector<16x128xf32>,
    return
  }
  func.func @transform_0(%arg0: i32) -> (i32, i32) {
    %c0_i32 = arith.constant 0 : i32
    %c0_i32_0 = arith.constant 0 : i32
    return %arg0, %c0_i32 : i32, i32
  }
  func.func @transform_1(%arg0: i32) -> (i32, i32) {
    %c0_i32 = arith.constant 0 : i32
    %c0_i32_0 = arith.constant 0 : i32
    %c0_i32_1 = arith.constant 0 : i32
    return %c0_i32, %c0_i32_0 : i32, i32
  }
  func.func @transform_2(%arg0: i32) -> (i32, i32) {
    %c0_i32 = arith.constant 0 : i32
    %c0_i32_0 = arith.constant 0 : i32
    %c0_i32_1 = arith.constant 0 : i32
    return %c0_i32, %c0_i32_0 : i32, i32
  }
  func.func @transform_3(%arg0: i32) -> (i32, i32) {
    %c0_i32 = arith.constant 0 : i32
    %c0_i32_0 = arith.constant 0 : i32
    return %arg0, %c0_i32 : i32, i32
  }
}

</mosaic_0001>

<bundles_post_ra>
// kernel: patch_embed.2
= control target key start
LH: loop header
LB: loop body
LE: loop exit
PB: predicated region body
PF: predicated region fallthrough
CT: control target
= control target key end

     0   :  { %s769_s0 = inlined_call_operand.vmem [shape: f32[128,128], index: 0, kind: input, shape index: {}]   ;;  %s770_s1 = inlined_call_operand.vmem [shape: f32[1,128], index: 1, kind: input, shape index: {}]   ;;  %s771_s2 = inlined_call_operand.vmem [shape: f32[32,64], index: 2, kind: input, shape index: {}]   ;;  %s772_s3 = inlined_call_operand.<no memory space> [shape: f32[], index: 3, kind: input, shape index: {}]   ;;  %s773_s4 = inlined_call_operand.hbm [shape: f32[32,128], index: 4, kind: output, shape index: {}]  }
   0x1   :  { %v9_v0 = vstv %s772_s3 }
   0x2   :  { %10 = vsyncpa [#allocation8], 0 }
   0x3   :  { %12 = vsyncpa [#allocation8 + $0x1], 0  ;;  %s606_s17 = smov 0   ;;  %s608_s18 = smov 0  }
   0x4   :  { %s610_s19 = smov 0   ;;  %s612_s20 = smov 0  }
   0x5 LB: > { %s627_s21 = sadd.s32 4294967295, %s573_s20   ;;  %s370_s22 = sadd.s32 4294967294, %s573_s20   ;;  %s573_s20 = sphi %s612_s20, %s779_s20   ;;  %s569_s19 = sphi %s610_s19, %s778_s19   ;;  %s565_s18 = sphi %s608_s18, %s777_s18   ;;  %s561_s17 = sphi %s606_s17, %s776_s17  }
   0x6   : > { %s631_s23 = sadd.s32 1, %s573_s20   ;;  %s93_s24 = sadd.s32 1, %s569_s19 }
   0x7   : > { %s90_s25 = ssub.s32 %s573_s20, %s631_s23  ;;  %p103_p0 = scmp.ne.s32.totalorder %s569_s19, %s565_s18 }
   0x8   : > { %p91_p1 = scmp.eq.s32.totalorder %s90_s25, 0  ;;  %p104_p2 = scmp.eq.s32.totalorder %s627_s21, 1 }
   0x9   : > { %p109_p3 = scmp.ne.s32.totalorder %s565_s18, %s561_s17  ;;  %p110_p4 = scmp.eq.s32.totalorder %s370_s22, 1 }
   0xa   : > { %s642_s26 = scalar_select %p91_p1, %s569_s19, %s93_s24  }
   0xb   : > { %p644_p5 = por %p104_p2, %p103_p0  ;;  %p648_p6 = por %p110_p4, %p109_p3 }
   0xc   : > { %p373_p7 = scmp.ge.s32.totalorder %s573_s20, 1  ;;  %p143_p8 = scmp.lt.s32.totalorder %s573_s20, 3 }
   0xe   : > { %p144_p9 = pnand %p373_p7, %p143_p8 }
   0xf   : > { %v194_v1 = vld [vmem:[%s769_s0] sm:$0xff] (!%p144_p9)  ;;  %v195_v2 = vld [vmem:[%s769_s0 + $0x8] sm:$0xff] (!%p144_p9)  ;;  %v196_v3 = vld [vmem:[%s769_s0 + $0x10] sm:$0xff] (!%p144_p9)  ;;  %s375_s9 = sshll.u32 (!%p144_p9), %s627_s21, 1  ;;  %v175_v4 = vlaneseq (!%p144_p9)  ;;  %s164_s11 = sand.u32 (!%p144_p9), 1, %s565_s18  }
  0x10   : > { %147 = sbr.rel (%p144_p9) target bundleno = 280 (0x118), region = 32  ;;  %v438_v5 = vpack.c.bf16 (!%p144_p9), %v195_v2, %v194_v1  ;;  %v197_v6 = vld [vmem:[%s769_s0 + $0x18] sm:$0xff] (!%p144_p9)  ;;  %p168_p10 = scmp.lt.s32.totalorder (!%p144_p9), %s375_s9, 3  ;;  %v198_v8 = vld [vmem:[%s769_s0 + $0x20] sm:$0xff] (!%p144_p9)  ;;  %v199_v9 = vld [vmem:[%s769_s0 + $0x28] sm:$0xff] (!%p144_p9) }
  0x11   : > { %v442_v7 = vpack.c.bf16 (!%p144_p9), %v197_v6, %v196_v3  ;;  %v176_v10 = vand.u32 (!%p144_p9), 127, %v175_v4  ;;  %v446_v11 = vpack.c.bf16 (!%p144_p9), %v199_v9, %v198_v8  ;;  %v200_v12 = vld [vmem:[%s769_s0 + $0x30] sm:$0xff] (!%p144_p9)  ;;  %v201_v13 = vld [vmem:[%s769_s0 + $0x38] sm:$0xff] (!%p144_p9)  ;;  %v202_v17 = vld [vmem:[%s769_s0 + $0x40] sm:$0xff] (!%p144_p9)  ;;  %s374_s12 = sshll.u32 (!%p144_p9), %s164_s11, 4  ;;  %s384_s22 = sshll.u32 (!%p144_p9), %s627_s21, 8 }
  0x12   : > { %439 = vmatprep.subr.bf16.mxu0 (!%p144_p9), %v438_v5  ;;  %v450_v16 = vpack.c.bf16 (!%p144_p9), %v201_v13, %v200_v12  ;;  %v203_v18 = vld [vmem:[%s769_s0 + $0x48] sm:$0xff] (!%p144_p9)  ;;  %v204_v20 = vld [vmem:[%s769_s0 + $0x50] sm:$0xff] (!%p144_p9)  ;;  %v205_v21 = vld [vmem:[%s769_s0 + $0x58] sm:$0xff] (!%p144_p9)  ;;  %s166_s15 = scalar_lea.vmem (!%p144_p9), [#allocation7], %s374_s12  ;;  %s726_s25 = scalar_lea.hbm (!%p144_p9), %s773_s4, %s384_s22 }
  0x13   : > { %441 = vmatpush3.bf16.msra.mxu0 (!%p144_p9), %v438_v5  ;;  %vm178_vm0 = vcmp.lt.s32.totalorder (!%p144_p9), %v176_v10, 64  ;;  %v454_v19 = vpack.c.bf16 (!%p144_p9), %v203_v18, %v202_v17  ;;  %v458_v22 = vpack.c.bf16 (!%p144_p9), %v205_v21, %v204_v20  ;;  %v206_v23 = vld [vmem:[%s769_s0 + $0x60] sm:$0xff] (!%p144_p9)  ;;  %v207_v24 = vld [vmem:[%s769_s0 + $0x68] sm:$0xff] (!%p144_p9)  ;;  %v208_v26 = vld [vmem:[%s769_s0 + $0x70] sm:$0xff] (!%p144_p9)  ;;  %s728_s29 = scalar_lea.sflag (!%p144_p9), [#allocation8], %s164_s11  ;;  %s575_s21 = smov (!%p144_p9), [#allocation7]  }
  0x14   : > { %443 = vmatprep.subr.bf16.mxu0 (!%p144_p9), %v442_v7  ;;  %v462_v25 = vpack.c.bf16 (!%p144_p9), %v207_v24, %v206_v23  ;;  %v209_v27 = vld [vmem:[%s769_s0 + $0x78] sm:$0xff] (!%p144_p9)  ;;  %v378_v31 = vld [vmem:[%s770_s1] ss:$0 sm:$0xff] (!%p144_p9)  ;;  %s515_s5 = sshll.u32 (!%p144_p9), %s575_s21, 4  ;;  %s516_s5 = int_to_ptr.vmem [resolvable:$false] %s515_s5 }
  0x15   : > { %v466_v28 = vpack.c.bf16 (!%p144_p9), %v209_v27, %v208_v26  ;;  %s517_s7 = scalar_lea.vmem (!%p144_p9), %s516_s5, 512 }
  0x17   : > { %s781_s9 = smov (!%p168_p10, %s375_s9), 3  ;;  %445 = vmatpush3.bf16.msra.mxu0 %v442_v7 }
  0x18   : > { %s376_s16 = sshll.u32 %s781_s9, 3  ;;  %447 = vmatprep.subr.bf16.mxu0 %v446_v11 }
  0x19   : > { %s171_s6 = scalar_lea.vmem %s771_s2, %s376_s16  ;;  %s308_s16 = sshll.u32 %s166_s15, 4  ;;  %s721_s16 = int_to_ptr.vmem [resolvable:$true] %s308_s16 }
  0x1a   : > { %v174_v14 = vld [vmem:[%s171_s6] sm:$0xff]  ;;  %v377_v29 = vld [vmem:[%s171_s6 + $0x8] sm:$0xff]  ;;  %s511_s30 = scalar_lea.vmem %s721_s16, 256  ;;  %p518_p0 = scmp.lt.s32.totalorder %s721_s16, %s516_s5 }
  0x1b   : > { %v179_v15 = vsel %vm178_vm0, %v174_v14, %v9_v0  ;;  %449 = vmatpush3.bf16.msra.mxu0 %v446_v11  ;;  %v188_v30 = vsel %vm178_vm0, %v377_v29, %v9_v0  ;;  %p512_p11 = scmp.ne.s32.totalorder %s721_s16, %s511_s30  ;;  %p519_p1 = scmp.lt.s32.totalorder %s517_s7, %s511_s30 }
  0x1c   : > { %435 = vmatprep.mubr.f32.mxu0 %v179_v15  ;;  %451 = vmatprep.subr.bf16.mxu0 %v450_v16 }
  0x1d   : > { %p513_p12 = pnand %p512_p11, %p644_p5  ;;  %p520_p2 = por %p519_p1, %p518_p0 }
  0x1f   : > { %453 = vmatpush3.bf16.msra.mxu0 %v450_v16  ;;  %p514_p13 = pneg %p513_p12 }
  0x20   : > { %455 = vmatprep.subr.bf16.mxu0 %v454_v19 }
  0x21   : > { %p521_p3 = pnand %p520_p2, %p514_p13 }
  0x23   : > { %457 = vmatpush3.bf16.msra.mxu0 %v454_v19 }
  0x24   : > { %459 = vmatprep.subr.bf16.mxu0 %v458_v22 }
  0x27   : > { %461 = vmatpush3.bf16.msra.mxu0 %v458_v22 }
  0x28   : > { %463 = vmatprep.subr.bf16.mxu0 %v462_v25 }
  0x2b   : > { %465 = vmatpush3.bf16.msra.mxu0 %v462_v25 }
  0x2c   : > { %467 = vmatprep.subr.bf16.mxu0 %v466_v28 }
  0x2f   : > { %469 = vmatpush3.bf16.msra.mxu0 %v466_v28 }
  0x32   : > { %436 = vmatmul.mubr.f32.vlgmr.msra.gmra.mrb[0].mxu0 %v188_v30 }
 0x105   : > { %v437_v32 = vpop.f32.mrb[0].mxu0 }
 0x106   : > { %v289_v33 = vadd.f32 %v437_v32, %v378_v31  ;;  %v283_v34 = vpop.f32.mrb[1].mxu0 }
 0x107   : > { %v284_v35 = vadd.f32 %v378_v31, %v283_v34 }
 0x108   : > { %293 = vst [vmem:[%s166_s15 + $0x8] sm:$0xff] %v289_v33 }
 0x109   : > { %292 = vst [vmem:[%s166_s15] sm:$0xff] %v284_v35 }
 0x10a   : > { %524 = shalt.err (!%p521_p3)
}
 0x10b   : > { %s525_s8 = scalar_lea.hbm %s726_s25, 256  ;;  %s529_s11 = scalar_lea.hbm %s773_s4, 512 }
 0x10c   : > { %p526_p4 = scmp.ne.s32.totalorder %s726_s25, %s525_s8  ;;  %p530_p9 = scmp.lt.u32.totalorder %s726_s25, %s773_s4 }
 0x10d   : > { %p531_p10 = scmp.lt.u32.totalorder %s529_s11, %s525_s8  ;;  %p533_p12 = scmp.lt.u32.totalorder %s525_s8, %s726_s25 }
 0x10e   : > { %p527_p7 = pnand %p526_p4, %p644_p5 }
 0x10f   : > { %p532_p11 = por %p531_p10, %p530_p9 }
 0x110   : > { %p528_p8 = pneg %p527_p7 }
 0x111   : > { %p534_p13 = por %p533_p12, %p532_p11 }
 0x113   : > { %p535_p0 = pnand %p534_p13, %p528_p8 }
 0x115   : > { %538 = shalt.err (!%p535_p0)
}
 0x116   : > { %s576_s14 = smov 128   ;;  %s577_s15 = smov 8  }
 0x117   : > { %470 = dma.vmem_to_hbm [thread:$0]  (%p644_p5), %s721_s16, 256, %s726_s25, %s728_s29, %s576_s14, %s576_s14, %s577_s15  }
 0x118 PF: > { %p476_p1 = scmp.ge.s32.totalorder %s573_s20, 2  ;;  %s323_s22 = sand.u32 1, %s561_s17  }
 0x119   : > { %s324_s6 = scalar_lea.sflag [#allocation8], %s323_s22 }
 0x11a   : > { %p473_p2 = pnand %p476_p1, %p648_p6 }
 0x11c   : > { %556 = dma.done.wait (!%p473_p2), %s324_s6, 256  }
 0x11d   : > { %558 = vsyncadd (!%p473_p2), %s324_s6, 4294967040  ;;  %p15_p3 = scmp.ge.s32.totalorder %s631_s23, 4   ;;  %s776_s17 = smov %s565_s18 }
 0x11e   : > { %s777_s18 = smov %s569_s19  ;;  %s778_s19 = smov %s642_s26 }
 0x11f   : > { %s779_s20 = smov %s631_s23  ;;  %17 = sbr.rel (!%p15_p3) target bundleno = 5 (0x5), region = 69 }
 0x126   :  { %329 = vsyncpa [#allocation8], 1 }
 0x127   :  { %331 = vsyncpa [#allocation8 + $0x1], 1 }

</bundles_post_ra>
